<compile_context>
chip_gen: v7x
topology: tpu7x:2x2x1
jax: 0.10.0
libtpu: 0.0.40
codegen_flags: <defaults>
</compile_context>

<pallas_src>
import jax
import jax.numpy as jnp
import numpy as np
from jax.experimental import pallas as pl
from jax.experimental.pallas import tpu as pltpu


def build_grid(resolution):
    """Standard slot-attention positional grid: (1, H, W, 2*len(resolution))."""
    ranges = [np.linspace(0.0, 1.0, num=res) for res in resolution]
    grid = np.meshgrid(*ranges, sparse=False, indexing="ij")
    grid = np.stack(grid, axis=-1)
    grid = np.reshape(grid, [resolution[0], resolution[1], -1])
    grid = np.expand_dims(grid, axis=0).astype(np.float32)
    return np.concatenate([grid, 1.0 - grid], axis=-1)  # (1, H, W, 4)


def _soft_pos_embed_kernel(grid_ref, w_ref, b_ref, x_ref, o_ref):
    # grid_ref: (Cin, HW)        -- position grid, channels-first (lane-dense)
    # w_ref:    (hidden, Cin)    -- PyTorch nn.Linear weight layout (out, in)
    # b_ref:    (hidden, 1)
    # x_ref/o_ref: (Bt, hidden, HW) -- Bt batch elements per grid step
    hidden, cin = w_ref.shape
    hw = grid_ref.shape[1]

    # emb[h, p] = b[h] + sum_c W[h, c] * grid[c, p]
    # Cin is tiny (4): unrolled VPU broadcast-FMAs; recomputed once per (merged)
    # grid step, which is 1-2 steps total -> negligible VALU work.
    emb = jnp.broadcast_to(b_ref[...], (hidden, hw))
    for c in range(cin):
        emb = emb + w_ref[:, c:c + 1] * grid_ref[c:c + 1, :]

    # (Bt, hidden, HW) + (hidden, HW): implicit broadcast over the leading dim.
    o_ref[...] = (x_ref[...] + emb).astype(o_ref.dtype)


def _choose_batch_tile(B, hidden, HW, itemsize, vmem_budget_bytes=16 << 20,
                       min_steps=2):
    """Largest Bt dividing B such that double-buffered in+out blocks fit the
    VMEM budget, keeping at least `min_steps` grid steps when B allows (so the
    'parallel' batch axis still shards across v7x's two TensorCores)."""
    min_steps = min(min_steps, B)
    best = 1
    for bt in range(1, B + 1):
        if B % bt:
            continue
        if B // bt < min_steps:
            continue
        # 2 pipeline buffers x (input block + output block)
        if 4 * bt * hidden * HW * itemsize > vmem_budget_bytes:
            continue
        best = bt
    return best


def soft_position_embed(inputs_nchw, grid_1hwc, weight, bias):
    """inputs_nchw: (B, hidden, H, W); grid_1hwc: (1, H, W, Cin);
    weight: (hidden, Cin) (PyTorch nn.Linear layout); bias: (hidden,)."""
    B, hidden, H, W = inputs_nchw.shape
    Cin = grid_1hwc.shape[-1]
    HW = H * W

    # Free reshape only (row-major compatible) -- no wrapper transposes of the
    # big tensor.
    x_flat = inputs_nchw.reshape(B, hidden, HW)
    # Tiny constant (Cin x HW = 4 KiB): transpose once so the kernel sees it
    # channels-first / lane-dense.
    grid_t = jnp.transpose(grid_1hwc.reshape(HW, Cin), (1, 0))  # (Cin, HW)
    b2d = bias.reshape(hidden, 1)

    bt = _choose_batch_tile(B, hidden, HW, inputs_nchw.dtype.itemsize)
    num_steps = B // bt

    out_flat = pl.pallas_call(
        _soft_pos_embed_kernel,
        out_shape=jax.ShapeDtypeStruct((B, hidden, HW), inputs_nchw.dtype),
        grid_spec=pltpu.PrefetchScalarGridSpec(
            num_scalar_prefetch=0,
            grid=(num_steps,),
            in_specs=[
                pl.BlockSpec((Cin, HW), lambda b: (0, 0)),            # grid^T (const)
                pl.BlockSpec((hidden, Cin), lambda b: (0, 0)),        # weight (const)
                pl.BlockSpec((hidden, 1), lambda b: (0, 0)),          # bias   (const)
                pl.BlockSpec((bt, hidden, HW), lambda b: (b, 0, 0)),  # inputs
            ],
            out_specs=pl.BlockSpec((bt, hidden, HW), lambda b: (b, 0, 0)),
        ),
        compiler_params=pltpu.CompilerParams(
            dimension_semantics=("parallel",)),  # batch axis shards across TCs (v7x)
    )(grid_t, weight, b2d, x_flat)

    # Free reshape back to NCHW.
    return out_flat.reshape(B, hidden, H, W)


if __name__ == "__main__":
    # Module config: num_channels=3 -> Linear in_features = 4 (2D grid concat),
    # hidden_size=32, resolution=(16,16). inputs: (B=2, hidden=32, 16, 16).
    num_channels = 3
    hidden_size = 32
    resolution = (16, 16)
    B = 2

    key = jax.random.PRNGKey(0)
    k_x, k_w, k_b = jax.random.split(key, 3)

    inputs = jax.random.normal(
        k_x, (B, hidden_size, resolution[0], resolution[1]), dtype=jnp.float32)
    # deterministic synthetic Linear params (PyTorch layout: weight (out, in))
    weight = jax.random.normal(
        k_w, (hidden_size, num_channels + 1), dtype=jnp.float32) * 0.1
    bias = jax.random.normal(k_b, (hidden_size,), dtype=jnp.float32) * 0.1

    grid_buf = jnp.asarray(build_grid(resolution))  # (1, 16, 16, 4)

    # reference (plain JAX)
    emb = jnp.einsum("lhwc,oc->lhwo", grid_buf, weight) + bias   # (1,H,W,hidden)
    emb = jnp.transpose(emb, (0, 3, 1, 2))                       # (1,hidden,H,W)
    ref = inputs + emb

    out = soft_position_embed(inputs, grid_buf, weight, bias)
    out = jax.block_until_ready(out)

    assert out.shape == inputs.shape
    assert np.allclose(np.asarray(out), np.asarray(ref), atol=1e-5), "mismatch"

    print("KERNEL_OK")
</pallas_src>

<mosaic_0001>
module attributes {stable_mosaic.version = 11 : i64} {
  func.func @_soft_pos_embed_kernel(%arg0: i32, %arg1: memref<4x256xf32, #tpu.memory_space<vmem>>, %arg2: memref<32x4xf32, #tpu.memory_space<vmem>>, %arg3: memref<32x1xf32, #tpu.memory_space<vmem>>, %arg4: memref<1x32x256xf32, #tpu.memory_space<vmem>>, %arg5: memref<1x32x256xf32, #tpu.memory_space<vmem>>) attributes {dimension_semantics = [#tpu.dimension_semantics<parallel>], iteration_bounds = array<i64: 2>, scalar_prefetch = 0 : i64, scratch_operands = 0 : i64, tpu.core_type = #tpu.core_type<tc>, window_params = [{pipeline_mode = #tpu.pipeline_mode<synchronous>, transform_indices = @transform_0, window_bounds = array<i64: 4, 256>}, {pipeline_mode = #tpu.pipeline_mode<synchronous>, transform_indices = @transform_1, window_bounds = array<i64: 32, 4>}, {pipeline_mode = #tpu.pipeline_mode<synchronous>, transform_indices = @transform_2, window_bounds = array<i64: 32, 1>}, {transform_indices = @transform_3, window_bounds = array<i64: 1, 32, 256>}, {transform_indices = @transform_4, window_bounds = array<i64: 1, 32, 256>}]} {
    %c0 = arith.constant 0 : index
    %c0_0 = arith.constant 0 : index
    %0 = vector.load %arg3[%c0, %c0_0] : memref<32x1xf32, #tpu.memory_space<vmem>>, vector<32x1xf32>
    %1 = vector.shape_cast %0 : vector<32x1xf32> to vector<32x1xf32>
    %2 = vector.broadcast %1 : vector<32x1xf32> to vector<32x256xf32>
    %c0_1 = arith.constant 0 : index
    %c0_2 = arith.constant 0 : index
    %3 = vector.load %arg2[%c0_1, %c0_2] : memref<32x4xf32, #tpu.memory_space<vmem>>, vector<32x1xf32>
    %c0_3 = arith.constant 0 : index
    %c0_4 = arith.constant 0 : index
    %4 = vector.load %arg1[%c0_3, %c0_4] : memref<4x256xf32, #tpu.memory_space<vmem>>, vector<1x256xf32>
    %5 = vector.broadcast %3 : vector<32x1xf32> to vector<32x256xf32>
    %6 = vector.broadcast %4 : vector<1x256xf32> to vector<32x256xf32>
    %7 = arith.mulf %5, %6 : vector<32x256xf32>
    %8 = arith.addf %2, %7 : vector<32x256xf32>
    %c0_5 = arith.constant 0 : index
    %c1 = arith.constant 1 : index
    %9 = vector.load %arg2[%c0_5, %c1] : memref<32x4xf32, #tpu.memory_space<vmem>>, vector<32x1xf32>
    %c1_6 = arith.constant 1 : index
    %c0_7 = arith.constant 0 : index
    %10 = vector.load %arg1[%c1_6, %c0_7] : memref<4x256xf32, #tpu.memory_space<vmem>>, vector<1x256xf32>
    %11 = vector.broadcast %9 : vector<32x1xf32> to vector<32x256xf32>
    %12 = vector.broadcast %10 : vector<1x256xf32> to vector<32x256xf32>
    %13 = arith.mulf %11, %12 : vector<32x256xf32>
    %14 = arith.addf %8, %13 : vector<32x256xf32>
    %c0_8 = arith.constant 0 : index
    %c2 = arith.constant 2 : index
    %15 = vector.load %arg2[%c0_8, %c2] : memref<32x4xf32, #tpu.memory_space<vmem>>, vector<32x1xf32>
    %c2_9 = arith.constant 2 : index
    %c0_10 = arith.constant 0 : index
    %16 = vector.load %arg1[%c2_9, %c0_10] : memref<4x256xf32, #tpu.memory_space<vmem>>, vector<1x256xf32>
    %17 = vector.broadcast %15 : vector<32x1xf32> to vector<32x256xf32>
    %18 = vector.broadcast %16 : vector<1x256xf32> to vector<32x256xf32>
    %19 = arith.mulf %17, %18 : vector<32x256xf32>
    %20 = arith.addf %14, %19 : vector<32x256xf32>
    %c0_11 = arith.constant 0 : index
    %c3 = arith.constant 3 : index
    %21 = vector.load %arg2[%c0_11, %c3] : memref<32x4xf32, #tpu.memory_space<vmem>>, vector<32x1xf32>
    %c3_12 = arith.constant 3 : index
    %c0_13 = arith.constant 0 : index
    %22 = vector.load %arg1[%c3_12, %c0_13] : memref<4x256xf32, #tpu.memory_space<vmem>>, vector<1x256xf32>
    %23 = vector.broadcast %21 : vector<32x1xf32> to vector<32x256xf32>
    %24 = vector.broadcast %22 : vector<1x256xf32> to vector<32x256xf32>
    %25 = arith.mulf %23, %24 : vector<32x256xf32>
    %26 = arith.addf %20, %25 : vector<32x256xf32>
    %c0_14 = arith.constant 0 : index
    %c0_15 = arith.constant 0 : index
    %c0_16 = arith.constant 0 : index
    %27 = vector.load %arg4[%c0_14, %c0_15, %c0_16] : memref<1x32x256xf32, #tpu.memory_space<vmem>>, vector<1x32x256xf32>
    %28 = vector.shape_cast %26 : vector<32x256xf32> to vector<1x32x256xf32>
    %29 = arith.addf %27, %28 : vector<1x32x256xf32>
    %c0_17 = arith.constant 0 : index
    %c0_18 = arith.constant 0 : index
    %c0_19 = arith.constant 0 : index
    %30 = vector.load %arg5[%c0_17, %c0_18, %c0_19] : memref<1x32x256xf32, #tpu.memory_space<vmem>>, vector<1x32x256xf32>
    tpu.vector_store %arg5[%c0_17, %c0_18, %c0_19], %29 {strides = array<i32>} : memref<1x32x256xf32, #tpu.memory_space<vmem>>, vector<1x32x256xf32>,
    return
  }
  func.func @transform_0(%arg0: i32) -> (i32, i32) {
    %c0_i32 = arith.constant 0 : i32
    %c0_i32_0 = arith.constant 0 : i32
    %c0_i32_1 = arith.constant 0 : i32
    return %c0_i32, %c0_i32_0 : i32, i32
  }
  func.func @transform_1(%arg0: i32) -> (i32, i32) {
    %c0_i32 = arith.constant 0 : i32
    %c0_i32_0 = arith.constant 0 : i32
    %c0_i32_1 = arith.constant 0 : i32
    return %c0_i32, %c0_i32_0 : i32, i32
  }
  func.func @transform_2(%arg0: i32) -> (i32, i32) {
    %c0_i32 = arith.constant 0 : i32
    %c0_i32_0 = arith.constant 0 : i32
    %c0_i32_1 = arith.constant 0 : i32
    return %c0_i32, %c0_i32_0 : i32, i32
  }
  func.func @transform_3(%arg0: i32) -> (i32, i32, i32) {
    %c0_i32 = arith.constant 0 : i32
    %c0_i32_0 = arith.constant 0 : i32
    %c0_i32_1 = arith.constant 0 : i32
    return %arg0, %c0_i32, %c0_i32_0 : i32, i32, i32
  }
  func.func @transform_4(%arg0: i32) -> (i32, i32, i32) {
    %c0_i32 = arith.constant 0 : i32
    %c0_i32_0 = arith.constant 0 : i32
    %c0_i32_1 = arith.constant 0 : i32
    return %arg0, %c0_i32, %c0_i32_0 : i32, i32, i32
  }
}

</mosaic_0001>

<bundles_post_ra>
// kernel: tpu_custom_call.1
= control target key start
LH: loop header
LB: loop body
LE: loop exit
PB: predicated region body
PF: predicated region fallthrough
CT: control target
= control target key end

     0   :  { %9 = vsyncpa [#allocation3], 0  ;;  %s1003_s0 = inlined_call_operand.vmem [shape: f32[4,256], index: 0, kind: input, shape index: {}]   ;;  %s1004_s1 = inlined_call_operand.vmem [shape: f32[32,4], index: 1, kind: input, shape index: {}]   ;;  %s1005_s2 = inlined_call_operand.vmem [shape: f32[32,1], index: 2, kind: input, shape index: {}]   ;;  %s1006_s3 = inlined_call_operand.hbm [shape: f32[2,32,256], index: 3, kind: input, shape index: {}]   ;;  %s1007_s4 = inlined_call_operand.hbm [shape: f32[2,32,256], index: 4, kind: output, shape index: {}]  }
   0x1   :  { %11 = vsyncpa [#allocation3 + $0x1], 0 }
   0x2   :  { %12 = vsyncpa [#allocation4], 0 }
   0x3   :  { %14 = vsyncpa [#allocation4 + $0x1], 0  ;;  %s752_s15 = smov 0   ;;  %s754_s16 = smov 0  }
   0x4   :  { %s756_s17 = smov 0   ;;  %s758_s18 = smov 0  }
   0x5 LB: > { %s773_s19 = sadd.s32 4294967295, %s715_s18   ;;  %s538_s20 = sadd.s32 4294967294, %s715_s18   ;;  %s715_s18 = sphi %s758_s18, %s1020_s18   ;;  %s711_s17 = sphi %s756_s17, %s1019_s17   ;;  %s707_s16 = sphi %s754_s16, %s1018_s16   ;;  %s703_s15 = sphi %s752_s15, %s1017_s15  }
   0x6   : > { %s777_s21 = sadd.s32 1, %s715_s18   ;;  %s90_s22 = sadd.s32 1, %s711_s17 }
   0x7   : > { %s87_s23 = ssub.s32 %s715_s18, %s777_s21  ;;  %p97_p0 = scmp.ne.s32.totalorder %s711_s17, %s707_s16 }
   0x8   : > { %p88_p1 = scmp.eq.s32.totalorder %s87_s23, 0  ;;  %p98_p2 = scmp.eq.s32.totalorder %s715_s18, 0 }
   0x9   : > { %p103_p3 = scmp.ne.s32.totalorder %s707_s16, %s703_s15  ;;  %p104_p4 = scmp.eq.s32.totalorder %s773_s19, 0 }
   0xa   : > { %s789_s24 = scalar_select %p88_p1, %s711_s17, %s90_s22  }
   0xb   : > { %p791_p5 = por %p98_p2, %p97_p0  ;;  %p795_p6 = por %p104_p4, %p103_p3 }
   0xc   : > { %p127_p7 = scmp.eq.s32.totalorder %s773_s19, 1  ;;  %p133_p8 = scmp.eq.s32.totalorder %s538_s20, 1 }
   0xd   : > { %p569_p10 = scmp.lt.s32.totalorder %s715_s18, 2  ;;  %s162_s29 = sand.u32 1, %s711_s17  }
   0xe   : > { %p802_p11 = por %p127_p7, %p97_p0  ;;  %p806_p12 = por %p133_p8, %p103_p3 }
   0xf   : > { %s555_s30 = sshll.u32 %s715_s18, 10  ;;  %s541_s5 = sshll.u32 %s162_s29, 6 }
  0x10   : > { %s1011_s27 = scalar_select %p802_p11, 1, 0 }
  0x11   : > { %s1012_s28 = scalar_select %p806_p12, 1, 0 }
  0x12   : > { %s815_s8 = scalar_lea.hbm %s1006_s3, %s555_s30  ;;  %s166_s9 = scalar_lea.vmem [#allocation2], %s541_s5 }
  0x13   : > { %s173_s10 = sshll.u32 %s166_s9, 4  ;;  %p819_p13 = pnand %p569_p10, %p791_p5  ;;  %s823_s10 = int_to_ptr.vmem [resolvable:$true] %s173_s10 }
  0x14   : > { %s825_s12 = scalar_lea.sflag [#allocation3], %s162_s29  ;;  %s619_s13 = scalar_lea.hbm %s815_s8, 1024 }
  0x15   : > { %p620_p0 = scmp.ne.s32.totalorder %s815_s8, %s619_s13  ;;  %p621_p1 = pneg %p819_p13 }
  0x16   : > { %s624_s22 = scalar_lea.hbm %s1006_s3, 2048  ;;  %p625_p4 = scmp.lt.u32.totalorder %s815_s8, %s1006_s3 }
  0x17   : > { %p622_p2 = pnand %p621_p1, %p620_p0  ;;  %p626_p5 = scmp.lt.u32.totalorder %s624_s22, %s619_s13 }
  0x18   : > { %p628_p8 = scmp.lt.u32.totalorder %s619_s13, %s815_s8 }
  0x19   : > { %p623_p3 = pneg %p622_p2  ;;  %p627_p7 = por %p626_p5, %p625_p4 }
  0x1b   : > { %p629_p10 = por %p628_p8, %p627_p7 }
  0x1d   : > { %p630_p9 = pnand %p629_p10, %p623_p3 }
  0x1f   : > { %633 = shalt.err (!%p630_p9)
}
  0x20   : > { %s634_s29 = scalar_lea.vmem %s823_s10, 1024  ;;  %s717_s30 = smov [#allocation2]  }
  0x21   : > { %p635_p0 = scmp.ne.s32.totalorder %s823_s10, %s634_s29  ;;  %s639_s5 = sshll.u32 %s717_s30, 4  ;;  %s640_s5 = int_to_ptr.vmem [resolvable:$false] %s639_s5 }
  0x22   : > { %s641_s6 = scalar_lea.vmem %s640_s5, 2048  ;;  %p642_p11 = scmp.lt.s32.totalorder %s823_s10, %s640_s5 }
  0x23   : > { %p637_p2 = pnand %p635_p0, %p621_p1  ;;  %p643_p4 = scmp.lt.s32.totalorder %s641_s6, %s634_s29 }
  0x25   : > { %p638_p12 = pneg %p637_p2  ;;  %p644_p5 = por %p643_p4, %p642_p11 }
  0x27   : > { %p645_p7 = pnand %p644_p5, %p638_p12 }
  0x29   : > { %648 = shalt.err (!%p645_p7)
}
  0x2a   : > { %s718_s7 = smov 256   ;;  %s719_s9 = smov 16  }
  0x2b   : > { %564 = dma.hbm_to_vmem [thread:$0]  (!%p819_p13), %s815_s8, 1024, %s823_s10, %s825_s12, %s718_s7, %s718_s7, %s719_s9  }
  0x2c   : > { %p544_p9 = scmp.ge.s32.totalorder %s715_s18, 1  ;;  %p181_p1 = scmp.lt.s32.totalorder %s715_s18, 3 }
  0x2e   : > { %p182_p3 = pnand %p544_p9, %p181_p1 }
  0x2f   : > { %s856_s13 = sand.u32 (!%p182_p3), 1, %s707_s16  }
  0x30   : > { %185 = sbr.rel (%p182_p3) target bundleno = 250 (0xfa), region = 36  ;;  %s545_s14 = sshll.u32 (!%p182_p3), %s856_s13, 6 }
  0x31   : > { %s188_s20 = scalar_lea.sflag (!%p182_p3), [#allocation3], %s856_s13  ;;  %s862_s22 = scalar_lea.vmem (!%p182_p3), [#allocation2], %s545_s14 }
  0x37   : > { %694 = dma.done.wait (%p795_p6), %s188_s20, 1024  }
  0x38   : > { %696 = vsyncadd (%p795_p6), %s188_s20, 4294966272  ;;  %v720_v0 = vmov 0   ;;  %v242_v1 = vld [vmem:[%s1004_s1 + $0x10] sm:$0xff]  ;;  %v240_v2 = vld [vmem:[%s1004_s1] sm:$0xff]  ;;  %v721_v9 = vmov 1   ;;  %v722_v10 = vmov 2   ;;  %v266_v18 = vlaneseq }
  0x39   : > { %612 = vset.pattern.permute.xlu1 %v720_v0  ;;  %611 = vset.pattern.permute.xlu0 %v720_v0  ;;  %v243_v3 = vld [vmem:[%s1004_s1 + $0x18] sm:$0xff]  ;;  %v241_v4 = vld [vmem:[%s1004_s1 + $0x8] sm:$0xff]  ;;  %v216_v6 = vld [vmem:[%s1005_s2] sm:$0xff]  ;;  %v723_v11 = vmov 3   ;;  %s930_s6 = scalar_lea.vmem [#allocation5], %s545_s14  ;;  %s556_s14 = sshll.u32 %s773_s19, 10 }
  0x3a   : > { %257 = vperm.xlu1 %612, %v242_v1   ;;  %247 = vperm.xlu0 %611, %v240_v2   ;;  %v217_v5 = vld [vmem:[%s1005_s2 + $0x8] sm:$0xff]  ;;  %v219_v7 = vld [vmem:[%s1005_s2 + $0x18] sm:$0xff]  ;;  %v218_v8 = vld [vmem:[%s1005_s2 + $0x10] sm:$0xff]  ;;  %v267_v21 = vshrl.u32 %v266_v18, 7  ;;  %s465_s7 = sshll.u32 %s930_s6, 4  ;;  %s955_s8 = scalar_lea.hbm %s1007_s4, %s556_s14  ;;  %s957_s7 = int_to_ptr.vmem [resolvable:$true] %s465_s7 }
  0x3b   : > { %v244_v26 = vld [vmem:[%s1003_s0] ss:$4 sm:$0x3]  ;;  %v547_v27 = vld [vmem:[%s1003_s0 + $0x1] ss:$4 sm:$0x3] }
  0x3c   : > { %v268_v24 = vsub.s32 0, %v267_v21  ;;  %v272_v25 = vsub.s32 1, %v267_v21  ;;  %v548_v30 = vld [vmem:[%s1003_s0 + $0x2] ss:$4 sm:$0x3]  ;;  %s452_s19 = scalar_lea.sflag [#allocation4], %s856_s13 }
  0x3d   : > { %v549_v39 = vld [vmem:[%s1003_s0 + $0x3] ss:$4 sm:$0x3]  ;;  %p1014_p11 = scmp.ne.s32.totalorder %s1011_s27, 0  ;;  %s724_s10 = smov [#allocation5]  }
  0x3e   : > { %262 = vperm.xlu1 %612, %v243_v3   ;;  %252 = vperm.xlu0 %611, %v241_v4   ;;  %v269_v31 = vrot.slane %v244_v26, %v268_v24  ;;  %v273_v32 = vrot.slane %v244_v26, %v272_v25  ;;  %v314_v33 = vrot.slane %v547_v27, %v268_v24  ;;  %s653_s11 = sshll.u32 %s724_s10, 4  ;;  %s654_s11 = int_to_ptr.vmem [resolvable:$false] %s653_s11 }
  0x3f   : > { %v318_v34 = vrot.slane %v547_v27, %v272_v25  ;;  %v903_v37 = vrot.slane %v548_v30, %v268_v24  ;;  %v905_v38 = vrot.slane %v548_v30, %v272_v25  ;;  %v910_v44 = vrot.slane %v549_v39, %v268_v24  ;;  %s655_s12 = scalar_lea.vmem %s654_s11, 2048  ;;  %p656_p8 = scmp.lt.s32.totalorder %s957_s7, %s654_s11 }
  0x40   : > { %v912_v45 = vrot.slane %v549_v39, %v272_v25 }
  0x42   : > { %227 = vperm.xlu1 %612, %v217_v5   ;;  %222 = vperm.xlu0 %611, %v216_v6  }
  0x46   : > { %237 = vperm.xlu1 %612, %v219_v7   ;;  %232 = vperm.xlu0 %611, %v218_v8   ;;  %v427_v8 = vld [vmem:[%s862_s22] sm:$0xff] }
  0x4a   : > { %614 = vset.pattern.permute.xlu1 %v721_v9  ;;  %613 = vset.pattern.permute.xlu0 %v721_v9  ;;  %v428_v9 = vld [vmem:[%s862_s22 + $0x8] sm:$0xff] }
  0x4b   : > { %299 = vperm.xlu1 %614, %v241_v4   ;;  %295 = vperm.xlu0 %613, %v240_v2  }
  0x4f   : > { %303 = vperm.xlu1 %614, %v242_v1   ;;  %307 = vperm.xlu0 %613, %v243_v3  }
  0x53   : > { %615 = vset.pattern.permute.xlu1 %v722_v10  ;;  %616 = vset.pattern.permute.xlu0 %v722_v10 }
  0x54   : > { %340 = vperm.xlu1 %615, %v240_v2   ;;  %344 = vperm.xlu0 %616, %v241_v4  }
  0x58   : > { %348 = vperm.xlu1 %615, %v242_v1   ;;  %617 = vset.pattern.permute.xlu0 %v723_v11 }
  0x59   : > { %385 = vperm.xlu0 %617, %v240_v2  }
  0x5c   : > { %352 = vperm.xlu1 %615, %v243_v3  }
  0x5d   : > { %397 = vperm.xlu0 %617, %v243_v3  }
  0x60   : > { %618 = vset.pattern.permute.xlu1 %v723_v11 }
  0x61   : > { %389 = vperm.xlu1 %618, %v241_v4  }
  0x65   : > { %393 = vperm.xlu1 %618, %v242_v1  }
  0xb9   : > { %v258_v12 = vpop.permute.xlu1 %257  ;;  %v248_v13 = vpop.permute.xlu0 %247 }
  0xba   : > { %v276_v35 = vmul.f32 %v269_v31, %v248_v13  ;;  %v277_v36 = vmul.f32 %v273_v32, %v248_v13  ;;  %v280_v59 = vmul.f32 %v269_v31, %v258_v12  ;;  %v281_v60 = vmul.f32 %v273_v32, %v258_v12 }
  0xbd   : > { %v263_v14 = vpop.permute.xlu1 %262  ;;  %v253_v15 = vpop.permute.xlu0 %252 }
  0xbe   : > { %v282_v50 = vmul.f32 %v269_v31, %v263_v14  ;;  %v283_v51 = vmul.f32 %v273_v32, %v263_v14  ;;  %v278_v52 = vmul.f32 %v269_v31, %v253_v15  ;;  %v279_v53 = vmul.f32 %v273_v32, %v253_v15 }
  0xc1   : > { %v228_v16 = vpop.permute.xlu1 %227  ;;  %v223_v17 = vpop.permute.xlu0 %222 }
  0xc2   : > { %v284_v46 = vadd.f32 %v276_v35, %v223_v17  ;;  %v285_v47 = vadd.f32 %v277_v36, %v223_v17  ;;  %v286_v4 = vadd.f32 %v278_v52, %v228_v16  ;;  %v287_v5 = vadd.f32 %v279_v53, %v228_v16  ;;  %v433_v36 = vld [vmem:[%s862_s22 + $0x30] sm:$0xff] }
  0xc5   : > { %v238_v19 = vpop.permute.xlu1 %237  ;;  %v892_v20 = vpop.permute.xlu0 %232 }
  0xc6   : > { %v290_v61 = vadd.f32 %v282_v50, %v238_v19  ;;  %v291_v62 = vadd.f32 %v283_v51, %v238_v19  ;;  %v288_v30 = vadd.f32 %v280_v59, %v892_v20  ;;  %v289_v31 = vadd.f32 %v281_v60, %v892_v20  ;;  %v431_v60 = vld [vmem:[%s862_s22 + $0x20] sm:$0xff] }
  0xca   : > { %v300_v22 = vpop.permute.xlu1 %299  ;;  %v296_v23 = vpop.permute.xlu0 %295 }
  0xcb   : > { %v321_v40 = vmul.f32 %v314_v33, %v296_v23  ;;  %v322_v41 = vmul.f32 %v318_v34, %v296_v23  ;;  %v323_v6 = vmul.f32 %v314_v33, %v300_v22  ;;  %v324_v7 = vmul.f32 %v318_v34, %v300_v22 }
  0xcd   : > { %v329_v54 = vadd.f32 %v321_v40, %v284_v46  ;;  %v330_v55 = vadd.f32 %v322_v41, %v285_v47  ;;  %v331_v32 = vadd.f32 %v323_v6, %v286_v4  ;;  %v332_v35 = vadd.f32 %v324_v7, %v287_v5 }
  0xce   : > { %v304_v28 = vpop.permute.xlu1 %303  ;;  %v308_v29 = vpop.permute.xlu0 %307 }
  0xcf   : > { %v327_v56 = vmul.f32 %v314_v33, %v308_v29  ;;  %v328_v57 = vmul.f32 %v318_v34, %v308_v29  ;;  %v325_v25 = vmul.f32 %v314_v33, %v304_v28  ;;  %v326_v26 = vmul.f32 %v318_v34, %v304_v28  ;;  %v434_v33 = vld [vmem:[%s862_s22 + $0x38] sm:$0xff] }
  0xd1   : > { %v335_v10 = vadd.f32 %v327_v56, %v290_v61  ;;  %v336_v11 = vadd.f32 %v328_v57, %v291_v62  ;;  %v333_v47 = vadd.f32 %v325_v25, %v288_v30  ;;  %v432_v61 = vld [vmem:[%s862_s22 + $0x28] sm:$0xff] }
  0xd3   : > { %v341_v42 = vpop.permute.xlu1 %340  ;;  %v345_v43 = vpop.permute.xlu0 %344 }
  0xd4   : > { %v366_v48 = vmul.f32 %v903_v37, %v341_v42  ;;  %v367_v49 = vmul.f32 %v905_v38, %v341_v42  ;;  %v368_v15 = vmul.f32 %v903_v37, %v345_v43  ;;  %v369_v17 = vmul.f32 %v905_v38, %v345_v43 }
  0xd6   : > { %v374_v0 = vadd.f32 %v366_v48, %v329_v54  ;;  %v375_v1 = vadd.f32 %v367_v49, %v330_v55  ;;  %v376_v41 = vadd.f32 %v368_v15, %v331_v32  ;;  %v377_v42 = vadd.f32 %v369_v17, %v332_v35 }
  0xd7   : > { %v349_v58 = vpop.permute.xlu1 %348  ;;  %v334_v48 = vadd.f32 %v326_v26, %v289_v31 }
  0xd8   : > { %v386_v63 = vpop.permute.xlu0 %385  ;;  %v370_v28 = vmul.f32 %v903_v37, %v349_v58  ;;  %v371_v34 = vmul.f32 %v905_v38, %v349_v58 }
  0xd9   : > { %v411_v2 = vmul.f32 %v910_v44, %v386_v63  ;;  %v412_v3 = vmul.f32 %v912_v45, %v386_v63 }
  0xda   : > { %v378_v53 = vadd.f32 %v370_v28, %v333_v47  ;;  %v379_v54 = vadd.f32 %v371_v34, %v334_v48 }
  0xdb   : > { %v419_v13 = vadd.f32 %v411_v2, %v374_v0  ;;  %v420_v14 = vadd.f32 %v412_v3, %v375_v1  ;;  %v353_v12 = vpop.permute.xlu1 %352 }
  0xdc   : > { %v372_v18 = vmul.f32 %v903_v37, %v353_v12  ;;  %v373_v19 = vmul.f32 %v905_v38, %v353_v12  ;;  %v398_v21 = vpop.permute.xlu0 %397  ;;  %v429_v37 = vld [vmem:[%s862_s22 + $0x10] sm:$0xff]  ;;  %v430_v38 = vld [vmem:[%s862_s22 + $0x18] sm:$0xff]  ;;  %s649_s22 = scalar_lea.vmem %s957_s7, 1024 }
  0xdd   : > { %v435_v16 = vadd.f32 %v427_v8, %v419_v13  ;;  %v436_v22 = vadd.f32 %v428_v9, %v420_v14  ;;  %v417_v23 = vmul.f32 %v910_v44, %v398_v21  ;;  %v418_v24 = vmul.f32 %v912_v45, %v398_v21  ;;  %p650_p6 = scmp.ne.s32.totalorder %s957_s7, %s649_s22  ;;  %p657_p10 = scmp.lt.s32.totalorder %s655_s12, %s649_s22 }
  0xde   : > { %v380_v27 = vadd.f32 %v372_v18, %v335_v10  ;;  %v381_v29 = vadd.f32 %v373_v19, %v336_v11 }
  0xdf   : > { %443 = vst [vmem:[%s930_s6] sm:$0xff] %v435_v16  ;;  %444 = vst [vmem:[%s930_s6 + $0x8] sm:$0xff] %v436_v22  ;;  %p651_p12 = pnand %p650_p6, %p1014_p11  ;;  %p658_p0 = por %p657_p10, %p656_p8 }
  0xe0   : > { %v425_v39 = vadd.f32 %v417_v23, %v380_v27  ;;  %v426_v40 = vadd.f32 %v418_v24, %v381_v29  ;;  %v390_v20 = vpop.permute.xlu1 %389 }
  0xe1   : > { %v413_v43 = vmul.f32 %v910_v44, %v390_v20  ;;  %v414_v46 = vmul.f32 %v912_v45, %v390_v20  ;;  %p652_p13 = pneg %p651_p12 }
  0xe2   : > { %v441_v49 = vadd.f32 %v433_v36, %v425_v39  ;;  %v442_v50 = vadd.f32 %v434_v33, %v426_v40 }
  0xe3   : > { %v421_v51 = vadd.f32 %v413_v43, %v376_v41  ;;  %v422_v52 = vadd.f32 %v414_v46, %v377_v42  ;;  %p659_p2 = pnand %p658_p0, %p652_p13 }
  0xe4   : > { %449 = vst [vmem:[%s930_s6 + $0x30] sm:$0xff] %v441_v49  ;;  %450 = vst [vmem:[%s930_s6 + $0x38] sm:$0xff] %v442_v50  ;;  %v394_v55 = vpop.permute.xlu1 %393 }
  0xe5   : > { %v437_v56 = vadd.f32 %v429_v37, %v421_v51  ;;  %v438_v57 = vadd.f32 %v430_v38, %v422_v52  ;;  %v415_v58 = vmul.f32 %v910_v44, %v394_v55  ;;  %v416_v59 = vmul.f32 %v912_v45, %v394_v55 }
  0xe7   : > { %445 = vst [vmem:[%s930_s6 + $0x10] sm:$0xff] %v437_v56  ;;  %446 = vst [vmem:[%s930_s6 + $0x18] sm:$0xff] %v438_v57  ;;  %v423_v62 = vadd.f32 %v415_v58, %v378_v53  ;;  %v424_v63 = vadd.f32 %v416_v59, %v379_v54 }
  0xe9   : > { %v439_v44 = vadd.f32 %v431_v60, %v423_v62  ;;  %v440_v45 = vadd.f32 %v432_v61, %v424_v63 }
  0xeb   : > { %447 = vst [vmem:[%s930_s6 + $0x20] sm:$0xff] %v439_v44  ;;  %448 = vst [vmem:[%s930_s6 + $0x28] sm:$0xff] %v440_v45 }
  0xec   : > { %662 = shalt.err (!%p659_p2)
}
  0xed   : > { %s663_s23 = scalar_lea.hbm %s955_s8, 1024  ;;  %s667_s26 = scalar_lea.hbm %s1007_s4, 2048 }
  0xee   : > { %p664_p4 = scmp.ne.s32.totalorder %s955_s8, %s663_s23  ;;  %p668_p9 = scmp.lt.u32.totalorder %s955_s8, %s1007_s4 }
  0xef   : > { %p669_p1 = scmp.lt.u32.totalorder %s667_s26, %s663_s23  ;;  %p671_p6 = scmp.lt.u32.totalorder %s663_s23, %s955_s8 }
  0xf0   : > { %p665_p5 = pnand %p664_p4, %p1014_p11 }
  0xf1   : > { %p670_p3 = por %p669_p1, %p668_p9 }
  0xf2   : > { %p666_p7 = pneg %p665_p5 }
  0xf3   : > { %p672_p12 = por %p671_p6, %p670_p3 }
  0xf5   : > { %p673_p13 = pnand %p672_p12, %p666_p7 }
  0xf7   : > { %676 = shalt.err (!%p673_p13)
}
  0xf8   : > { %s725_s6 = smov 256   ;;  %s726_s14 = smov 16  }
  0xf9   : > { %559 = dma.vmem_to_hbm [thread:$0]  (%p1014_p11), %s957_s7, 1024, %s955_s8, %s452_s19, %s725_s6, %s725_s6, %s726_s14  }
  0xfa PF: > { %s480_s9 = sand.u32 1, %s703_s15   ;;  %p1015_p8 = scmp.ne.s32.totalorder %s1012_s28, 0 }
  0xfb   : > { %p1016_p10 = scmp.ge.s32.totalorder %s715_s18, 2  ;;  %s481_s20 = scalar_lea.sflag [#allocation4], %s480_s9 }
  0xfd   : > { %p566_p0 = pnand %p1016_p10, %p1015_p8 }
  0xff   : > { %698 = dma.done.wait (!%p566_p0), %s481_s20, 1024  }
 0x100   : > { %700 = vsyncadd (!%p566_p0), %s481_s20, 4294966272  ;;  %p17_p2 = scmp.ge.s32.totalorder %s777_s21, 4   ;;  %s1017_s15 = smov %s707_s16 }
 0x101   : > { %s1018_s16 = smov %s711_s17  ;;  %s1019_s17 = smov %s789_s24 }
 0x102   : > { %s1020_s18 = smov %s777_s21  ;;  %19 = sbr.rel (!%p17_p2) target bundleno = 5 (0x5), region = 84 }
 0x109   :  { %486 = vsyncpa [#allocation3], 1 }
 0x10a   :  { %488 = vsyncpa [#allocation3 + $0x1], 1 }
 0x10b   :  { %489 = vsyncpa [#allocation4], 1 }
 0x10c   :  { %491 = vsyncpa [#allocation4 + $0x1], 1 }

</bundles_post_ra>
